<compile_context>
chip_gen: v5e
topology: v5e:2x2
jax: 0.10.0
libtpu: 0.0.40
codegen_flags: <defaults>
</compile_context>

<pallas_src>
import functools

import jax
import jax.numpy as jnp
from jax.experimental import pallas as pl
from jax.experimental.pallas import tpu as pltpu


def _channel_attention_kernel(x_ref, w1_ref, w2_ref, out_ref,
                              max_acc, sum_acc, *, hw_total, t_hw, tb):
    """Grid = (batch-tile, hw-tile); hw-tile is the reduction axis.

    x_ref   : (TB, C, T_HW)  input tile (C on sublanes, spatial on lanes)
    w1_ref  : (C, Cr)        first 1x1-conv weight (transposed)
    w2_ref  : (Cr, C)        second 1x1-conv weight (transposed)
    out_ref : (1, TB, C)     lane-dense attention slab for this batch tile
    max_acc : (TB, C) f32    running max scratch
    sum_acc : (TB, C) f32    running sum scratch
    """
    h = pl.program_id(1)

    @pl.when(h == 0)
    def _init():
        max_acc[...] = jnp.full_like(max_acc, -jnp.inf)
        sum_acc[...] = jnp.zeros_like(sum_acc)

    xb = x_ref[...].astype(jnp.float32)                       # (TB, C, T_HW)

    # Mask the padded tail of the last HW tile: -inf for max, 0 for sum.
    lane = jax.lax.broadcasted_iota(jnp.int32, xb.shape, 2)
    valid = (h * t_hw + lane) < hw_total
    x_for_max = jnp.where(valid, xb, -jnp.inf)
    x_for_sum = jnp.where(valid, xb, 0.0)

    # Lane-axis reductions -> (TB, C) with C still on lanes (no relayout).
    max_acc[...] = jnp.maximum(max_acc[...], jnp.max(x_for_max, axis=-1))
    sum_acc[...] = sum_acc[...] + jnp.sum(x_for_sum, axis=-1)

    @pl.when(h == pl.num_programs(1) - 1)
    def _finalize():
        max_v = max_acc[...]                                   # (TB, C)
        avg_v = sum_acc[...] * (1.0 / hw_total)                # (TB, C)
        pooled = jnp.concatenate([max_v, avg_v], axis=0)       # (2*TB, C) sublane concat
        hdn = jnp.dot(pooled, w1_ref[...],
                      preferred_element_type=jnp.float32)      # (2*TB, Cr)
        hdn = jnp.maximum(hdn, 0.0)                            # ReLU
        o = jnp.dot(hdn, w2_ref[...],
                    preferred_element_type=jnp.float32)        # (2*TB, C)
        att = jax.nn.sigmoid(o[:tb] + o[tb:])                  # (TB, C)
        out_ref[...] = att[None].astype(out_ref.dtype)         # (1, TB, C)


def channel_attention(x_nchw, w1, w2):
    """x_nchw: (B, C, H, W) float32; w1: (C, C//r); w2: (C//r, C).

    Returns the attention map with shape (B, C, 1, 1), matching PyTorch.
    """
    B, C, H, W = x_nchw.shape
    HW = H * W
    Cr = w1.shape[1]
    assert w1.shape == (C, Cr) and w2.shape == (Cr, C)

    # ---- tiling -----------------------------------------------------------
    # Spatial tile: whole HW if small (lane dim equal to the full array dim is
    # always legal); otherwise a lane-aligned 512-wide chunk (multiple of 128)
    # with the ragged tail masked in-kernel.
    t_hw = HW if HW <= 512 else 512
    n_hw = pl.cdiv(HW, t_hw)

    # Batch tile: target ~2 MiB input tiles (fits default scoped VMEM with
    # double buffering on v5e/v6e/v7x). Keep >=2 batch grid steps when B
    # allows so both v7x TensorCores get work on the "parallel" axis.
    bytes_per_batch_row = C * t_hw * 4
    tb = max(1, min(B, (2 * 1024 * 1024) // max(bytes_per_batch_row, 1)))
    if B >= 2:
        tb = min(tb, pl.cdiv(B, 2))
    n_b = pl.cdiv(B, tb)
    b_pad = n_b * tb

    x_flat = x_nchw.reshape(B, C, HW).astype(jnp.float32)
    if b_pad != B:
        # Zero-pad the ragged batch tail; padded rows are computed but sliced off.
        x_flat = jnp.pad(x_flat, ((0, b_pad - B), (0, 0), (0, 0)))

    kernel = functools.partial(_channel_attention_kernel,
                               hw_total=HW, t_hw=t_hw, tb=tb)

    cost = pl.CostEstimate(
        flops=2 * B * C * HW + 8 * B * C * Cr,   # pools + tiny SE MLP
        transcendentals=B * C,                   # sigmoid
        bytes_accessed=B * C * HW * 4 + 2 * C * Cr * 4 + B * C * 4,
    )

    out = pl.pallas_call(
        kernel,
        out_shape=jax.ShapeDtypeStruct((n_b, tb, C), jnp.float32),
        grid_spec=pltpu.PrefetchScalarGridSpec(
            num_scalar_prefetch=0,
            grid=(n_b, n_hw),
            in_specs=[
                pl.BlockSpec((tb, C, t_hw), lambda b, h: (b, 0, h)),
                pl.BlockSpec((C, Cr), lambda b, h: (0, 0)),
                pl.BlockSpec((Cr, C), lambda b, h: (0, 0)),
            ],
            # Same output block across the HW axis -> resident accumulator
            # block, written only on the last HW step.
            out_specs=pl.BlockSpec((1, tb, C), lambda b, h: (b, 0, 0)),
            scratch_shapes=[
                pltpu.VMEM((tb, C), jnp.float32),   # running max
                pltpu.VMEM((tb, C), jnp.float32),   # running sum
            ],
        ),
        compiler_params=pltpu.CompilerParams(
            dimension_semantics=("parallel", "arbitrary")),
        cost_estimate=cost,
    )(x_flat, w1, w2)

    return out.reshape(b_pad, C)[:B].reshape(B, C, 1, 1)


def _reference(x_nchw, w1, w2):
    """Pure-JAX reference mirroring the PyTorch forward."""
    max_r = jnp.max(x_nchw, axis=(2, 3))             # (B, C)
    avg_r = jnp.mean(x_nchw, axis=(2, 3))            # (B, C)

    def se(v):
        return jnp.maximum(v @ w1, 0.0) @ w2

    return jax.nn.sigmoid(se(max_r) + se(avg_r)).reshape(*max_r.shape, 1, 1)


if __name__ == "__main__":
    key = jax.random.PRNGKey(0)
    B, C, H, W = 2, 64, 16, 16
    reduction = 16
    Cr = C // reduction

    kx, k1, k2 = jax.random.split(key, 3)
    x = jax.random.normal(kx, (B, C, H, W), dtype=jnp.float32)
    # "Conv2d 1x1" weights stored transposed relative to PyTorch's
    # (out, in, 1, 1) layout so the kernel can matmul directly.
    w1 = jax.random.normal(k1, (C, Cr), dtype=jnp.float32) * (1.0 / jnp.sqrt(C))
    w2 = jax.random.normal(k2, (Cr, C), dtype=jnp.float32) * (1.0 / jnp.sqrt(Cr))

    out = channel_attention(x, w1, w2)
    jax.block_until_ready(out)

    ref = _reference(x, w1, w2)
    assert out.shape == (B, C, 1, 1)
    assert jnp.allclose(out, ref, atol=1e-5, rtol=1e-5), "mismatch vs reference"

    print("KERNEL_OK")
</pallas_src>

<mosaic_0001>
module attributes {stable_mosaic.version = 11 : i64} {
  func.func @_channel_attention_kernel(%arg0: i32, %arg1: i32, %arg2: memref<1x64x256xf32, #tpu.memory_space<vmem>>, %arg3: memref<64x4xf32, #tpu.memory_space<vmem>>, %arg4: memref<4x64xf32, #tpu.memory_space<vmem>>, %arg5: memref<1x1x64xf32, #tpu.memory_space<vmem>>, %arg6: memref<1x64xf32, #tpu.memory_space<vmem>>, %arg7: memref<1x64xf32, #tpu.memory_space<vmem>>) attributes {dimension_semantics = [#tpu.dimension_semantics<parallel>, #tpu.dimension_semantics<arbitrary>], iteration_bounds = array<i64: 2, 1>, scalar_prefetch = 0 : i64, scratch_operands = 2 : i64, tpu.core_type = #tpu.core_type<tc>, window_params = [{transform_indices = @transform_0, window_bounds = array<i64: 1, 64, 256>}, {pipeline_mode = #tpu.pipeline_mode<synchronous>, transform_indices = @transform_1, window_bounds = array<i64: 64, 4>}, {pipeline_mode = #tpu.pipeline_mode<synchronous>, transform_indices = @transform_2, window_bounds = array<i64: 4, 64>}, {transform_indices = @transform_3, window_bounds = array<i64: 1, 1, 64>}]} {
    %c0_i32 = arith.constant 0 : i32
    %0 = arith.cmpi eq, %arg1, %c0_i32 : i32
    %1 = arith.extui %0 : i1 to i32
    %c0_i32_0 = arith.constant 0 : i32
    %2 = arith.cmpi ne, %1, %c0_i32_0 : i32
    scf.if %2 {
      %cst_17 = arith.constant 0xFF800000 : f32
      %25 = vector.broadcast %cst_17 : f32 to vector<1x64xf32>
      %c0_18 = arith.constant 0 : index
      %c0_19 = arith.constant 0 : index
      %26 = vector.load %arg6[%c0_18, %c0_19] : memref<1x64xf32, #tpu.memory_space<vmem>>, vector<1x64xf32>
      tpu.vector_store %arg6[%c0_18, %c0_19], %25 {strides = array<i32>} : memref<1x64xf32, #tpu.memory_space<vmem>>, vector<1x64xf32>,
      %cst_20 = arith.constant 0.000000e+00 : f32
      %27 = vector.broadcast %cst_20 : f32 to vector<1x64xf32>
      %c0_21 = arith.constant 0 : index
      %c0_22 = arith.constant 0 : index
      %28 = vector.load %arg7[%c0_21, %c0_22] : memref<1x64xf32, #tpu.memory_space<vmem>>, vector<1x64xf32>
      tpu.vector_store %arg7[%c0_21, %c0_22], %27 {strides = array<i32>} : memref<1x64xf32, #tpu.memory_space<vmem>>, vector<1x64xf32>,
    } else {
    }
    %c0 = arith.constant 0 : index
    %c0_1 = arith.constant 0 : index
    %c0_2 = arith.constant 0 : index
    %3 = vector.load %arg2[%c0, %c0_1, %c0_2] : memref<1x64x256xf32, #tpu.memory_space<vmem>>, vector<1x64x256xf32>
    %4 = tpu.iota {dimensions = array<i32: 2>} : vector<1x64x256xi32>
    %c256_i32 = arith.constant 256 : i32
    %5 = arith.muli %arg1, %c256_i32 : i32
    %6 = vector.broadcast %5 : i32 to vector<1x64x256xi32>
    %7 = arith.addi %6, %4 : vector<1x64x256xi32>
    %c256_i32_3 = arith.constant 256 : i32
    %8 = vector.broadcast %c256_i32_3 : i32 to vector<1x64x256xi32>
    %9 = arith.cmpi slt, %7, %8 : vector<1x64x256xi32>
    %cst = arith.constant 0xFF800000 : f32
    %10 = vector.broadcast %cst : f32 to vector<1x64x256xf32>
    %11 = arith.select %9, %3, %10 : vector<1x64x256xi1>, vector<1x64x256xf32>
    %cst_4 = arith.constant 0.000000e+00 : f32
    %12 = vector.broadcast %cst_4 : f32 to vector<1x64x256xf32>
    %13 = arith.select %9, %3, %12 : vector<1x64x256xi1>, vector<1x64x256xf32>
    %c0_5 = arith.constant 0 : index
    %c0_6 = arith.constant 0 : index
    %14 = vector.load %arg6[%c0_5, %c0_6] : memref<1x64xf32, #tpu.memory_space<vmem>>, vector<1x64xf32>
    %cst_7 = arith.constant dense<0xFF800000> : vector<1x64xf32>
    %15 = vector.multi_reduction <maximumf>, %11, %cst_7 [2] : vector<1x64x256xf32> to vector<1x64xf32>
    %16 = arith.maximumf %14, %15 : vector<1x64xf32>
    %c0_8 = arith.constant 0 : index
    %c0_9 = arith.constant 0 : index
    %17 = vector.load %arg6[%c0_8, %c0_9] : memref<1x64xf32, #tpu.memory_space<vmem>>, vector<1x64xf32>
    tpu.vector_store %arg6[%c0_8, %c0_9], %16 {strides = array<i32>} : memref<1x64xf32, #tpu.memory_space<vmem>>, vector<1x64xf32>,
    %c0_10 = arith.constant 0 : index
    %c0_11 = arith.constant 0 : index
    %18 = vector.load %arg7[%c0_10, %c0_11] : memref<1x64xf32, #tpu.memory_space<vmem>>, vector<1x64xf32>
    %cst_12 = arith.constant dense<0.000000e+00> : vector<1x64xf32>
    %19 = vector.multi_reduction <add>, %13, %cst_12 [2] : vector<1x64x256xf32> to vector<1x64xf32>
    %20 = arith.addf %18, %19 : vector<1x64xf32>
    %c0_13 = arith.constant 0 : index
    %c0_14 = arith.constant 0 : index
    %21 = vector.load %arg7[%c0_13, %c0_14] : memref<1x64xf32, #tpu.memory_space<vmem>>, vector<1x64xf32>
    tpu.vector_store %arg7[%c0_13, %c0_14], %20 {strides = array<i32>} : memref<1x64xf32, #tpu.memory_space<vmem>>, vector<1x64xf32>,
    %c0_i32_15 = arith.constant 0 : i32
    %22 = arith.cmpi eq, %arg1, %c0_i32_15 : i32
    %23 = arith.extui %22 : i1 to i32
    %c0_i32_16 = arith.constant 0 : i32
    %24 = arith.cmpi ne, %23, %c0_i32_16 : i32
    scf.if %24 {
      %c0_17 = arith.constant 0 : index
      %c0_18 = arith.constant 0 : index
      %25 = vector.load %arg6[%c0_17, %c0_18] : memref<1x64xf32, #tpu.memory_space<vmem>>, vector<1x64xf32>
      %c0_19 = arith.constant 0 : index
      %c0_20 = arith.constant 0 : index
      %26 = vector.load %arg7[%c0_19, %c0_20] : memref<1x64xf32, #tpu.memory_space<vmem>>, vector<1x64xf32>
      %cst_21 = arith.constant 3.906250e-03 : f32
      %27 = vector.broadcast %cst_21 : f32 to vector<1x64xf32>
      %28 = arith.mulf %26, %27 : vector<1x64xf32>
      %29 = tpu.concatenate %25, %28 in 0 : vector<1x64xf32>, vector<1x64xf32> -> vector<2x64xf32>
      %c0_22 = arith.constant 0 : index
      %c0_23 = arith.constant 0 : index
      %30 = vector.load %arg3[%c0_22, %c0_23] : memref<64x4xf32, #tpu.memory_space<vmem>>, vector<64x4xf32>
      %cst_24 = arith.constant dense<0.000000e+00> : vector<2x4xf32>
      %31 = tpu.matmul %29, %30, %cst_24 {dimension_numbers = #tpu.dot_dimension_numbers<[1], [0], [0], [1], [0, 0, 1, 1], [], []>} : vector<2x64xf32>, vector<64x4xf32>, vector<2x4xf32> -> vector<2x4xf32>
      %cst_25 = arith.constant 0.000000e+00 : f32
      %32 = vector.broadcast %cst_25 : f32 to vector<2x4xf32>
      %33 = arith.maximumf %31, %32 : vector<2x4xf32>
      %c0_26 = arith.constant 0 : index
      %c0_27 = arith.constant 0 : index
      %34 = vector.load %arg4[%c0_26, %c0_27] : memref<4x64xf32, #tpu.memory_space<vmem>>, vector<4x64xf32>
      %cst_28 = arith.constant dense<0.000000e+00> : vector<2x64xf32>
      %35 = tpu.matmul %33, %34, %cst_28 {dimension_numbers = #tpu.dot_dimension_numbers<[1], [0], [0], [1], [0, 0, 1, 1], [], []>} : vector<2x4xf32>, vector<4x64xf32>, vector<2x64xf32> -> vector<2x64xf32>
      %36 = vector.extract_strided_slice %35 {offsets = [0, 0], sizes = [1, 64], strides = [1, 1]} : vector<2x64xf32> to vector<1x64xf32>
      %37 = vector.extract_strided_slice %35 {offsets = [1, 0], sizes = [1, 64], strides = [1, 1]} : vector<2x64xf32> to vector<1x64xf32>
      %38 = arith.addf %36, %37 : vector<1x64xf32>
      %39 = arith.negf %38 : vector<1x64xf32>
      %40 = math.exp %39 : vector<1x64xf32>
      %cst_29 = arith.constant 1.000000e+00 : f32
      %41 = vector.broadcast %cst_29 : f32 to vector<1x64xf32>
      %42 = arith.addf %41, %40 : vector<1x64xf32>
      %43 = arith.divf %41, %42 : vector<1x64xf32>
      %44 = vector.shape_cast %43 : vector<1x64xf32> to vector<1x1x64xf32>
      %c0_30 = arith.constant 0 : index
      %c0_31 = arith.constant 0 : index
      %c0_32 = arith.constant 0 : index
      %45 = vector.load %arg5[%c0_30, %c0_31, %c0_32] : memref<1x1x64xf32, #tpu.memory_space<vmem>>, vector<1x1x64xf32>
      tpu.vector_store %arg5[%c0_30, %c0_31, %c0_32], %44 {strides = array<i32>} : memref<1x1x64xf32, #tpu.memory_space<vmem>>, vector<1x1x64xf32>,
    } else {
    }
    return
  }
  func.func @transform_0(%arg0: i32, %arg1: i32) -> (i32, i32, i32) {
    %c0_i32 = arith.constant 0 : i32
    %c0_i32_0 = arith.constant 0 : i32
    return %arg0, %c0_i32, %arg1 : i32, i32, i32
  }
  func.func @transform_1(%arg0: i32, %arg1: i32) -> (i32, i32) {
    %c0_i32 = arith.constant 0 : i32
    %c0_i32_0 = arith.constant 0 : i32
    %c0_i32_1 = arith.constant 0 : i32
    return %c0_i32, %c0_i32_0 : i32, i32
  }
  func.func @transform_2(%arg0: i32, %arg1: i32) -> (i32, i32) {
    %c0_i32 = arith.constant 0 : i32
    %c0_i32_0 = arith.constant 0 : i32
    %c0_i32_1 = arith.constant 0 : i32
    return %c0_i32, %c0_i32_0 : i32, i32
  }
  func.func @transform_3(%arg0: i32, %arg1: i32) -> (i32, i32, i32) {
    %c0_i32 = arith.constant 0 : i32
    %c0_i32_0 = arith.constant 0 : i32
    %c0_i32_1 = arith.constant 0 : i32
    return %arg0, %c0_i32, %c0_i32_0 : i32, i32, i32
  }
}

</mosaic_0001>

<bundles_post_ra>
// kernel: tpu_custom_call.1
= control target key start
LH: loop header
LB: loop body
LE: loop exit
PB: predicated region body
PF: predicated region fallthrough
CT: control target
= control target key end

     0   :  { %8 = vsyncpa [#allocation5], 0  ;;  %s1329_s0 = inlined_call_operand.hbm [shape: f32[2,64,256], index: 0, kind: input, shape index: {}]   ;;  %s1330_s1 = inlined_call_operand.vmem [shape: f32[64,4], index: 1, kind: input, shape index: {}]   ;;  %s1331_s2 = inlined_call_operand.vmem [shape: f32[4,64], index: 2, kind: input, shape index: {}]   ;;  %s1332_s3 = inlined_call_operand.hbm [shape: f32[2,1,64], index: 3, kind: output, shape index: {}]  }
   0x1   :  { %10 = vsyncpa [#allocation5 + $0x1], 0 }
   0x2   :  { %11 = vsyncpa [#allocation6], 0 }
   0x3   :  { %13 = vsyncpa [#allocation6 + $0x1], 0  ;;  %s1138_s12 = smov 0   ;;  %s1140_s13 = smov 0  }
   0x4   :  { %s1142_s14 = smov 0   ;;  %s1144_s15 = smov 0  }
   0x5   :  { %s1146_s16 = smov 0   ;;  %s1148_s17 = smov 0  }
   0x6 LB: > { %s909_s18 = sadd.s32 4294967295, %s1111_s17   ;;  %s910_s19 = sadd.s32 4294967294, %s1111_s17   ;;  %s1111_s17 = sphi %s1148_s17, %s19_s17   ;;  %s1107_s16 = sphi %s1146_s16, %s1341_s16   ;;  %s1103_s15 = sphi %s1144_s15, %s1340_s15   ;;  %s1099_s14 = sphi %s1142_s14, %s1339_s14   ;;  %s1095_s13 = sphi %s1140_s13, %s1338_s13   ;;  %s1091_s12 = sphi %s1138_s12, %s1337_s12  }
   0x7   : > { %s31_s20 = sadd.s32 1, %s1107_s16  ;;  %s40_s21 = sadd.s32 1, %s1099_s14 }
   0x8   : > { %p33_p0 = scmp.ge.s32.totalorder %s31_s20, 2  ;;  %p47_p1 = scmp.ne.s32.totalorder %s1099_s14, %s1095_s13 }
   0x9   : > { %p48_p2 = scmp.eq.s32.totalorder %s1111_s17, 0  ;;  %p53_p3 = scmp.ne.s32.totalorder %s1095_s13, %s1091_s12 }
   0xa   : > { %s1343_s20 = smov (%p33_p0, %s31_s20), 0  ;;  %p54_p5 = scmp.eq.s32.totalorder %s909_s18, 0 }
   0xb   : > { %p1179_p4 = por %p48_p2, %p47_p1  ;;  %s35_s23 = ssub.s32 %s1107_s16, %s1343_s20 }
   0xc   : > { %p119_p6 = scmp.eq.s32.totalorder %s909_s18, 1  ;;  %p38_p7 = scmp.eq.s32.totalorder %s35_s23, 0 }
   0xd   : > { %p1185_p8 = por %p54_p5, %p53_p3  ;;  %p125_p10 = scmp.eq.s32.totalorder %s910_s19, 1 }
   0xe   : > { %p1189_p9 = por %p119_p6, %p47_p1  ;;  %p912_p12 = scmp.ge.s32.totalorder %s1111_s17, 2 }
   0xf   : > { %s1194_s26 = scalar_select %p38_p7, %s1099_s14, %s40_s21  }
  0x10   : > { %p1196_p11 = por %p125_p10, %p53_p3  ;;  %p937_p13 = scmp.lt.s32.totalorder %s1111_s17, 2 }
  0x11   : > { %s151_s28 = sand.u32 1, %s1099_s14   ;;  %s924_s30 = sshll.u32 %s1107_s16, 7 }
  0x12   : > { %s913_s29 = sshll.u32 %s151_s28, 7  ;;  %s162_s6 = scalar_lea.hbm %s1329_s0, %s924_s30 }
  0x13   : > { %s155_s7 = scalar_lea.vmem [#allocation4], %s913_s29  ;;  %s163_s9 = sshll.u32 %s162_s6, 4  ;;  %s164_s9 = int_to_ptr.hbm [resolvable:$true] %s163_s9 }
  0x14   : > { %s165_s8 = sshll.u32 %s155_s7, 4  ;;  %p930_p0 = pnand %p937_p13, %p1179_p4  ;;  %s166_s8 = int_to_ptr.vmem [resolvable:$true] %s165_s8 }
  0x15   : > { %p916_p1 = scmp.ge.s32.totalorder %s1111_s17, 1  ;;  %s152_s10 = scalar_lea.sflag [#allocation5], %s151_s28 }
  0x16   : > { %s1113_s11 = smov 256   ;;  %s1114_s18 = smov 16  }
  0x17   : > { %932 = dma.hbm_to_vmem [thread:$0]  (!%p930_p0), %s164_s9, 2048, %s166_s8, %s152_s10, %s1113_s11, %s1113_s11, %s1114_s18  }
  0x18   : > { %p173_p2 = scmp.lt.s32.totalorder %s1111_s17, 3 }
  0x1a   : > { %p174_p3 = pnand %p916_p1, %p173_p2 }
  0x1b   : > { %s1212_s19 = sand.u32 (!%p174_p3), 1, %s1095_s13  }
  0x1c   : > { %177 = sbr.rel (%p174_p3) target bundleno = 822 (0x336), region = 32  ;;  %s917_s21 = sshll.u32 (!%p174_p3), %s1212_s19, 7 }
  0x1d   : > { %s180_s23 = scalar_lea.sflag (!%p174_p3), [#allocation5], %s1212_s19  ;;  %s183_s29 = scalar_lea.vmem (!%p174_p3), [#allocation4], %s917_s21 }
  0x21   : > { %1082 = dma.done.wait (%p1185_p8), %s180_s23, 2048  }
  0x22   : > { %1084 = vsyncadd (%p1185_p8), %s180_s23, 4294965248  ;;  %v214_v0 = vld [vmem:[%s183_s29] sm:$0xff]  ;;  %v215_v1 = vld [vmem:[%s183_s29 + $0x8] sm:$0xff]  ;;  %v1115_v32 = vmov 0   ;;  %vm211_vm0 = vcmask 516096   ;;  %vm474_vm1 = vcmask 130112   ;;  %s828_s4 = scalar_lea.hbm %s1332_s3, %s1103_s15 }
  0x23   : > { %v272_v2 = vmax.f32 %v214_v0, %v215_v1  ;;  %v218_v3 = vld [vmem:[%s183_s29 + $0x20] sm:$0xff]  ;;  %v219_v4 = vld [vmem:[%s183_s29 + $0x28] sm:$0xff]  ;;  %v216_v8 = vld [vmem:[%s183_s29 + $0x10] sm:$0xff]  ;;  %v505_v24 = vadd.f32 %v215_v1, %v214_v0  ;;  %992 = vset.pattern.permute.xlu2 %v1115_v32  ;;  %993 = vset.pattern.permute.xlu1 %v1115_v32  ;;  %vm478_vm2 = vcmask 195712   ;;  %vm482_vm3 = vcmask 261312   ;;  %s205_s5 = scalar_lea.vmem [#allocation7], %s1212_s19 }
  0x24   : > { %v278_v5 = vmax.f32 %v218_v3, %v219_v4  ;;  %v222_v6 = vld [vmem:[%s183_s29 + $0x40] sm:$0xff]  ;;  %v223_v7 = vld [vmem:[%s183_s29 + $0x48] sm:$0xff]  ;;  %v217_v9 = vld [vmem:[%s183_s29 + $0x18] sm:$0xff]  ;;  %v511_v26 = vadd.f32 %v219_v4, %v218_v3  ;;  %994 = vset.pattern.permute.xlu0 %v1115_v32  ;;  %vm486_vm4 = vcmask 326912   ;;  %vm494_vm5 = vcmask 458112   ;;  %s830_s6 = sshll.u32 %s205_s5, 4  ;;  %s831_s6 = int_to_ptr.vmem [resolvable:$true] %s830_s6 }
  0x25   : > { %273 = vmax.xlane.f32.xlu0 %v272_v2  ;;  %v284_v10 = vmax.f32 %v222_v6, %v223_v7  ;;  %v220_v11 = vld [vmem:[%s183_s29 + $0x30] sm:$0xff]  ;;  %v221_v12 = vld [vmem:[%s183_s29 + $0x38] sm:$0xff]  ;;  %v275_v13 = vmax.f32 %v216_v8, %v217_v9  ;;  %v226_v18 = vld [vmem:[%s183_s29 + $0x60] sm:$0xff]  ;;  %v508_v25 = vadd.f32 %v217_v9, %v216_v8  ;;  %v517_v28 = vadd.f32 %v223_v7, %v222_v6  ;;  %s832_s7 = sshll.u32 %s828_s4, 4  ;;  %s820_s15 = scalar_lea.sflag [#allocation6], %s1212_s19  ;;  %s833_s7 = int_to_ptr.hbm [resolvable:$true] %s832_s7 }
  0x26   : > { %279 = vmax.xlane.f32.xlu1 %v278_v5  ;;  %v224_v14 = vld [vmem:[%s183_s29 + $0x50] sm:$0xff]  ;;  %v225_v15 = vld [vmem:[%s183_s29 + $0x58] sm:$0xff]  ;;  %v281_v16 = vmax.f32 %v220_v11, %v221_v12  ;;  %v227_v19 = vld [vmem:[%s183_s29 + $0x68] sm:$0xff]  ;;  %v514_v27 = vadd.f32 %v221_v12, %v220_v11  ;;  %vm490_vm6 = vcmask 392512   ;;  %vm498_vm7 = vcmask 523712   ;;  %s1043_s8 = sshra.s32 %s833_s7, 4  ;;  %s1044_s8 = int_to_ptr.hbm [resolvable:$true] %s1043_s8 }
  0x27   : > { %285 = vmax.xlane.f32.xlu2 %v284_v10  ;;  %v287_v17 = vmax.f32 %v224_v14, %v225_v15  ;;  %v228_v20 = vld [vmem:[%s183_s29 + $0x70] sm:$0xff]  ;;  %v229_v21 = vld [vmem:[%s183_s29 + $0x78] sm:$0xff]  ;;  %v290_v22 = vmax.f32 %v226_v18, %v227_v19  ;;  %v520_v29 = vadd.f32 %v225_v15, %v224_v14  ;;  %v523_v30 = vadd.f32 %v227_v19, %v226_v18  ;;  %s1045_s9 = scalar_lea.hbm %s1044_s8, 1  ;;  %s1049_s18 = scalar_lea.hbm %s1332_s3, 2 }
  0x28   : > { %v293_v23 = vmax.f32 %v228_v20, %v229_v21  ;;  %v526_v31 = vadd.f32 %v229_v21, %v228_v20  ;;  %vm731_vm8 = vcmask 1040384   ;;  %vm741_vm9 = vcmask 523264   ;;  %p1046_p4 = scmp.ne.s32.totalorder %s1044_s8, %s1045_s9  ;;  %p1050_p7 = scmp.lt.s32.totalorder %s1044_s8, %s1332_s3 }
  0x29   : > { %vm771_vm10 = vcmask 1043456   ;;  %vm767_vm11 = vcmask 31744   ;;  %p1051_p8 = scmp.lt.s32.totalorder %s1049_s18, %s1045_s9 }
  0x2a   : > { %p1047_p5 = pnand %p1046_p4, %p1189_p9 }
  0x2b   : > { %p1052_p10 = por %p1051_p8, %p1050_p7 }
  0x2c   : > { %p1048_p6 = pneg %p1047_p5 }
  0x2d   : > { %276 = vmax.xlane.f32.xlu0 %v275_v13 }
  0x2e   : > { %282 = vmax.xlane.f32.xlu1 %v281_v16  ;;  %p1053_p13 = pnand %p1052_p10, %p1048_p6 }
  0x2f   : > { %288 = vmax.xlane.f32.xlu2 %v287_v17 }
  0x35   : > { %291 = vmax.xlane.f32.xlu0 %v290_v22 }
  0x36   : > { %294 = vmax.xlane.f32.xlu1 %v293_v23 }
  0x37   : > { %506 = vadd.xlane.f32.xlu2 %v505_v24 }
  0x3d   : > { %509 = vadd.xlane.f32.xlu0 %v508_v25 }
  0x3e   : > { %512 = vadd.xlane.f32.xlu1 %v511_v26 }
  0x3f   : > { %515 = vadd.xlane.f32.xlu2 %v514_v27 }
  0x45   : > { %518 = vadd.xlane.f32.xlu0 %v517_v28 }
  0x46   : > { %521 = vadd.xlane.f32.xlu1 %v520_v29 }
  0x47   : > { %524 = vadd.xlane.f32.xlu2 %v523_v30 }
  0x4d   : > { %527 = vadd.xlane.f32.xlu0 %v526_v31 }
  0x98   : > { %v274_v33 = vpop.xlane.xlu0 %273 }
  0x99   : > { %v304_v34 = vperm.slane %v274_v33, 0  ;;  %v305_v35 = vperm.slane %v274_v33, 1  ;;  %v306_v36 = vperm.slane %v274_v33, 2  ;;  %v307_v37 = vperm.slane %v274_v33, 3  ;;  %v280_v52 = vpop.xlane.xlu1 %279 }
  0x9a   : > { %v308_v38 = vperm.slane %v274_v33, 4  ;;  %v309_v39 = vperm.slane %v274_v33, 5  ;;  %v310_v40 = vperm.slane %v274_v33, 6  ;;  %v311_v41 = vperm.slane %v274_v33, 7  ;;  %v286_v8 = vpop.xlane.xlu2 %285 }
  0x9b   : > { %368 = vst [vmem:[#allocation1] ss:$9 sm:$0xff] %v304_v34  ;;  %v320_v53 = vperm.slane %v280_v52, 0  ;;  %v321_v54 = vperm.slane %v280_v52, 1  ;;  %v322_v55 = vperm.slane %v280_v52, 2  ;;  %v323_v57 = vperm.slane %v280_v52, 3 }
  0x9c   : > { %370 = vst [vmem:[#allocation1 + $0x1] ss:$9 sm:$0xff] %v305_v35  ;;  %v324_v58 = vperm.slane %v280_v52, 4  ;;  %v325_v59 = vperm.slane %v280_v52, 5  ;;  %v326_v60 = vperm.slane %v280_v52, 6  ;;  %v327_v61 = vperm.slane %v280_v52, 7 }
  0x9d   : > { %372 = vst [vmem:[#allocation1 + $0x2] ss:$9 sm:$0xff] %v306_v36  ;;  %v336_v9 = vperm.slane %v286_v8, 0  ;;  %v337_v10 = vperm.slane %v286_v8, 1  ;;  %v338_v11 = vperm.slane %v286_v8, 2  ;;  %v339_v13 = vperm.slane %v286_v8, 3 }
  0x9e   : > { %374 = vst [vmem:[#allocation1 + $0x3] ss:$9 sm:$0xff] %v307_v37  ;;  %v340_v14 = vperm.slane %v286_v8, 4  ;;  %v341_v15 = vperm.slane %v286_v8, 5  ;;  %v342_v16 = vperm.slane %v286_v8, 6  ;;  %v343_v17 = vperm.slane %v286_v8, 7 }
  0x9f   : > { %376 = vst [vmem:[#allocation1 + $0x4] ss:$9 sm:$0xff] %v308_v38 }
  0xa0   : > { %378 = vst [vmem:[#allocation1 + $0x5] ss:$9 sm:$0xff] %v309_v39  ;;  %v277_v42 = vpop.xlane.xlu0 %276 }
  0xa1   : > { %380 = vst [vmem:[#allocation1 + $0x6] ss:$9 sm:$0xff] %v310_v40  ;;  %v312_v43 = vperm.slane %v277_v42, 0  ;;  %v313_v44 = vperm.slane %v277_v42, 1  ;;  %v314_v45 = vperm.slane %v277_v42, 2  ;;  %v315_v47 = vperm.slane %v277_v42, 3  ;;  %v283_v62 = vpop.xlane.xlu1 %282 }
  0xa2   : > { %382 = vst [vmem:[#allocation1 + $0x7] ss:$9 sm:$0xff] %v311_v41  ;;  %v316_v48 = vperm.slane %v277_v42, 4  ;;  %v317_v49 = vperm.slane %v277_v42, 5  ;;  %v318_v50 = vperm.slane %v277_v42, 6  ;;  %v319_v51 = vperm.slane %v277_v42, 7  ;;  %v289_v18 = vpop.xlane.xlu2 %288 }
  0xa3   : > { %v328_v63 = vperm.slane %v283_v62, 0  ;;  %v329_v0 = vperm.slane %v283_v62, 1  ;;  %v330_v1 = vperm.slane %v283_v62, 2  ;;  %v331_v3 = vperm.slane %v283_v62, 3 }
  0xa4   : > { %v332_v4 = vperm.slane %v283_v62, 4  ;;  %v333_v5 = vperm.slane %v283_v62, 5  ;;  %v334_v6 = vperm.slane %v283_v62, 6  ;;  %v335_v7 = vperm.slane %v283_v62, 7 }
  0xa5   : > { %v344_v19 = vperm.slane %v289_v18, 0  ;;  %v345_v20 = vperm.slane %v289_v18, 1  ;;  %v346_v21 = vperm.slane %v289_v18, 2  ;;  %v347_v23 = vperm.slane %v289_v18, 3 }
  0xa6   : > { %v348_v24 = vperm.slane %v289_v18, 4  ;;  %v349_v25 = vperm.slane %v289_v18, 5  ;;  %v350_v26 = vperm.slane %v289_v18, 6  ;;  %v351_v27 = vperm.slane %v289_v18, 7 }
  0xa8   : > { %v292_v28 = vpop.xlane.xlu0 %291 }
  0xa9   : > { %v383_v46 = vld [vmem:[#allocation1] sm:$0xff]  ;;  %v352_v29 = vperm.slane %v292_v28, 0  ;;  %v353_v30 = vperm.slane %v292_v28, 1  ;;  %v354_v31 = vperm.slane %v292_v28, 2  ;;  %v355_v33 = vperm.slane %v292_v28, 3  ;;  %v295_v38 = vpop.xlane.xlu1 %294 }
  0xaa   : > { %384 = vst [vmem:[#allocation1] ss:$9 sm:$0xff] %v312_v43  ;;  %448 = vperm.xlu2 %992, %v383_v46   ;;  %v356_v34 = vperm.slane %v292_v28, 4  ;;  %v357_v35 = vperm.slane %v292_v28, 5  ;;  %v358_v36 = vperm.slane %v292_v28, 6  ;;  %v359_v37 = vperm.slane %v292_v28, 7 }
  0xab   : > { %385 = vst [vmem:[#allocation1 + $0x1] ss:$9 sm:$0xff] %v313_v44  ;;  %v360_v39 = vperm.slane %v295_v38, 0  ;;  %v361_v40 = vperm.slane %v295_v38, 1  ;;  %v362_v41 = vperm.slane %v295_v38, 2  ;;  %v363_v43 = vperm.slane %v295_v38, 3 }
  0xac   : > { %386 = vst [vmem:[#allocation1 + $0x2] ss:$9 sm:$0xff] %v314_v45  ;;  %v364_v44 = vperm.slane %v295_v38, 4  ;;  %v365_v45 = vperm.slane %v295_v38, 5  ;;  %v366_v46 = vperm.slane %v295_v38, 6 }
  0xad   : > { %387 = vst [vmem:[#allocation1 + $0x3] ss:$9 sm:$0xff] %v315_v47  ;;  %v367_v47 = vperm.slane %v295_v38, 7 }
  0xae   : > { %388 = vst [vmem:[#allocation1 + $0x4] ss:$9 sm:$0xff] %v316_v48  ;;  %v507_v48 = vpop.xlane.xlu2 %506 }
  0xaf   : > { %389 = vst [vmem:[#allocation1 + $0x5] ss:$9 sm:$0xff] %v317_v49  ;;  %v537_v49 = vperm.slane %v507_v48, 0 }
  0xb0   : > { %390 = vst [vmem:[#allocation1 + $0x6] ss:$9 sm:$0xff] %v318_v50  ;;  %v538_v50 = vperm.slane %v507_v48, 1 }
  0xb1   : > { %391 = vst [vmem:[#allocation1 + $0x7] ss:$9 sm:$0xff] %v319_v51  ;;  %v539_v51 = vperm.slane %v507_v48, 2 }
  0xb8   : > { %v392_v56 = vld [vmem:[#allocation1] sm:$0xff] }
  0xb9   : > { %393 = vst [vmem:[#allocation1] ss:$9 sm:$0xff] %v320_v53  ;;  %451 = vperm.xlu1 %993, %v392_v56   ;;  %v540_v53 = vperm.slane %v507_v48, 3  ;;  %v543_v56 = vperm.slane %v507_v48, 6 }
  0xba   : > { %394 = vst [vmem:[#allocation1 + $0x1] ss:$9 sm:$0xff] %v321_v54  ;;  %v541_v54 = vperm.slane %v507_v48, 4 }
  0xbb   : > { %395 = vst [vmem:[#allocation1 + $0x2] ss:$9 sm:$0xff] %v322_v55  ;;  %v542_v55 = vperm.slane %v507_v48, 5 }
  0xbc   : > { %396 = vst [vmem:[#allocation1 + $0x3] ss:$9 sm:$0xff] %v323_v57  ;;  %v544_v57 = vperm.slane %v507_v48, 7 }
  0xbd   : > { %397 = vst [vmem:[#allocation1 + $0x4] ss:$9 sm:$0xff] %v324_v58  ;;  %v510_v58 = vpop.xlane.xlu0 %509 }
  0xbe   : > { %398 = vst [vmem:[#allocation1 + $0x5] ss:$9 sm:$0xff] %v325_v59  ;;  %v545_v59 = vperm.slane %v510_v58, 0 }
  0xbf   : > { %399 = vst [vmem:[#allocation1 + $0x6] ss:$9 sm:$0xff] %v326_v60  ;;  %v546_v60 = vperm.slane %v510_v58, 1 }
  0xc0   : > { %400 = vst [vmem:[#allocation1 + $0x7] ss:$9 sm:$0xff] %v327_v61  ;;  %v547_v61 = vperm.slane %v510_v58, 2 }
  0xc7   : > { %v401_v2 = vld [vmem:[#allocation1] sm:$0xff] }
  0xc8   : > { %402 = vst [vmem:[#allocation1] ss:$9 sm:$0xff] %v328_v63  ;;  %454 = vperm.xlu1 %993, %v401_v2   ;;  %v548_v63 = vperm.slane %v510_v58, 3  ;;  %v551_v2 = vperm.slane %v510_v58, 6 }
  0xc9   : > { %403 = vst [vmem:[#allocation1 + $0x1] ss:$9 sm:$0xff] %v329_v0  ;;  %v549_v0 = vperm.slane %v510_v58, 4 }
  0xca   : > { %404 = vst [vmem:[#allocation1 + $0x2] ss:$9 sm:$0xff] %v330_v1  ;;  %v550_v1 = vperm.slane %v510_v58, 5 }
  0xcb   : > { %405 = vst [vmem:[#allocation1 + $0x3] ss:$9 sm:$0xff] %v331_v3  ;;  %v552_v3 = vperm.slane %v510_v58, 7 }
  0xcc   : > { %406 = vst [vmem:[#allocation1 + $0x4] ss:$9 sm:$0xff] %v332_v4  ;;  %v513_v4 = vpop.xlane.xlu1 %512 }
  0xcd   : > { %407 = vst [vmem:[#allocation1 + $0x5] ss:$9 sm:$0xff] %v333_v5  ;;  %v553_v5 = vperm.slane %v513_v4, 0 }
  0xce   : > { %408 = vst [vmem:[#allocation1 + $0x6] ss:$9 sm:$0xff] %v334_v6  ;;  %v554_v6 = vperm.slane %v513_v4, 1 }
  0xcf   : > { %409 = vst [vmem:[#allocation1 + $0x7] ss:$9 sm:$0xff] %v335_v7  ;;  %v555_v7 = vperm.slane %v513_v4, 2 }
  0xd6   : > { %v410_v12 = vld [vmem:[#allocation1] sm:$0xff] }
  0xd7   : > { %411 = vst [vmem:[#allocation1] ss:$9 sm:$0xff] %v336_v9  ;;  %457 = vperm.xlu2 %992, %v410_v12   ;;  %v556_v9 = vperm.slane %v513_v4, 3  ;;  %v559_v12 = vperm.slane %v513_v4, 6 }
  0xd8   : > { %412 = vst [vmem:[#allocation1 + $0x1] ss:$9 sm:$0xff] %v337_v10  ;;  %v557_v10 = vperm.slane %v513_v4, 4 }
  0xd9   : > { %413 = vst [vmem:[#allocation1 + $0x2] ss:$9 sm:$0xff] %v338_v11  ;;  %v558_v11 = vperm.slane %v513_v4, 5 }
  0xda   : > { %414 = vst [vmem:[#allocation1 + $0x3] ss:$9 sm:$0xff] %v339_v13  ;;  %v560_v13 = vperm.slane %v513_v4, 7 }
  0xdb   : > { %415 = vst [vmem:[#allocation1 + $0x4] ss:$9 sm:$0xff] %v340_v14  ;;  %v516_v14 = vpop.xlane.xlu2 %515 }
  0xdc   : > { %416 = vst [vmem:[#allocation1 + $0x5] ss:$9 sm:$0xff] %v341_v15  ;;  %v561_v15 = vperm.slane %v516_v14, 0 }
  0xdd   : > { %417 = vst [vmem:[#allocation1 + $0x6] ss:$9 sm:$0xff] %v342_v16  ;;  %v562_v16 = vperm.slane %v516_v14, 1 }
  0xde   : > { %418 = vst [vmem:[#allocation1 + $0x7] ss:$9 sm:$0xff] %v343_v17  ;;  %v563_v17 = vperm.slane %v516_v14, 2 }
  0xe5   : > { %v419_v22 = vld [vmem:[#allocation1] sm:$0xff] }
  0xe6   : > { %420 = vst [vmem:[#allocation1] ss:$9 sm:$0xff] %v344_v19  ;;  %460 = vperm.xlu0 %994, %v419_v22   ;;  %v564_v19 = vperm.slane %v516_v14, 3  ;;  %v567_v22 = vperm.slane %v516_v14, 6 }
  0xe7   : > { %421 = vst [vmem:[#allocation1 + $0x1] ss:$9 sm:$0xff] %v345_v20  ;;  %v565_v20 = vperm.slane %v516_v14, 4 }
  0xe8   : > { %422 = vst [vmem:[#allocation1 + $0x2] ss:$9 sm:$0xff] %v346_v21  ;;  %v566_v21 = vperm.slane %v516_v14, 5 }
  0xe9   : > { %423 = vst [vmem:[#allocation1 + $0x3] ss:$9 sm:$0xff] %v347_v23  ;;  %v568_v23 = vperm.slane %v516_v14, 7 }
  0xea   : > { %424 = vst [vmem:[#allocation1 + $0x4] ss:$9 sm:$0xff] %v348_v24  ;;  %v519_v24 = vpop.xlane.xlu0 %518 }
  0xeb   : > { %425 = vst [vmem:[#allocation1 + $0x5] ss:$9 sm:$0xff] %v349_v25  ;;  %v569_v25 = vperm.slane %v519_v24, 0 }
  0xec   : > { %426 = vst [vmem:[#allocation1 + $0x6] ss:$9 sm:$0xff] %v350_v26  ;;  %v570_v26 = vperm.slane %v519_v24, 1 }
  0xed   : > { %427 = vst [vmem:[#allocation1 + $0x7] ss:$9 sm:$0xff] %v351_v27  ;;  %v571_v27 = vperm.slane %v519_v24, 2 }
  0xf4   : > { %v1220_v32 = vld [vmem:[#allocation1] sm:$0xff] }
  0xf5   : > { %429 = vst [vmem:[#allocation1] ss:$9 sm:$0xff] %v352_v29  ;;  %v572_v29 = vperm.slane %v519_v24, 3 }
  0xf6   : > { %430 = vst [vmem:[#allocation1 + $0x1] ss:$9 sm:$0xff] %v353_v30  ;;  %v573_v30 = vperm.slane %v519_v24, 4 }
  0xf7   : > { %431 = vst [vmem:[#allocation1 + $0x2] ss:$9 sm:$0xff] %v354_v31  ;;  %v574_v31 = vperm.slane %v519_v24, 5 }
  0xf8   : > { %432 = vst [vmem:[#allocation1 + $0x3] ss:$9 sm:$0xff] %v355_v33  ;;  %v575_v33 = vperm.slane %v519_v24, 6 }
  0xf9   : > { %433 = vst [vmem:[#allocation1 + $0x4] ss:$9 sm:$0xff] %v356_v34  ;;  %v576_v34 = vperm.slane %v519_v24, 7 }
  0xfa   : > { %434 = vst [vmem:[#allocation1 + $0x5] ss:$9 sm:$0xff] %v357_v35  ;;  %v522_v35 = vpop.xlane.xlu1 %521 }
  0xfb   : > { %435 = vst [vmem:[#allocation1 + $0x6] ss:$9 sm:$0xff] %v358_v36  ;;  %v577_v36 = vperm.slane %v522_v35, 0  ;;  %v579_v38 = vperm.slane %v522_v35, 2 }
  0xfc   : > { %436 = vst [vmem:[#allocation1 + $0x7] ss:$9 sm:$0xff] %v359_v37  ;;  %v578_v37 = vperm.slane %v522_v35, 1 }
 0x103   : > { %v1222_v42 = vld [vmem:[#allocation1] sm:$0xff] }
 0x104   : > { %438 = vst [vmem:[#allocation1] ss:$9 sm:$0xff] %v360_v39  ;;  %v580_v39 = vperm.slane %v522_v35, 3 }
 0x105   : > { %439 = vst [vmem:[#allocation1 + $0x1] ss:$9 sm:$0xff] %v361_v40 }
 0x106   : > { %440 = vst [vmem:[#allocation1 + $0x2] ss:$9 sm:$0xff] %v362_v41  ;;  %v581_v41 = vperm.slane %v522_v35, 4 }
 0x107   : > { %441 = vst [vmem:[#allocation1 + $0x3] ss:$9 sm:$0xff] %v363_v43  ;;  %v582_v43 = vperm.slane %v522_v35, 5 }
 0x108   : > { %442 = vst [vmem:[#allocation1 + $0x4] ss:$9 sm:$0xff] %v364_v44  ;;  %v583_v44 = vperm.slane %v522_v35, 6 }
 0x109   : > { %443 = vst [vmem:[#allocation1 + $0x5] ss:$9 sm:$0xff] %v365_v45  ;;  %v584_v45 = vperm.slane %v522_v35, 7 }
 0x10a   : > { %444 = vst [vmem:[#allocation1 + $0x6] ss:$9 sm:$0xff] %v366_v46  ;;  %v525_v46 = vpop.xlane.xlu2 %524 }
 0x10b   : > { %445 = vst [vmem:[#allocation1 + $0x7] ss:$9 sm:$0xff] %v367_v47  ;;  %v585_v47 = vperm.slane %v525_v46, 0  ;;  %v586_v48 = vperm.slane %v525_v46, 1 }
 0x112   : > { %v1224_v52 = vld [vmem:[#allocation1] sm:$0xff]  ;;  %v1230_v4 = vpop.permute.xlu2 %448 }
 0x113   : > { %601 = vst [vmem:[#allocation1] ss:$9 sm:$0xff] %v537_v49  ;;  %v587_v49 = vperm.slane %v525_v46, 2 }
 0x114   : > { %603 = vst [vmem:[#allocation1 + $0x1] ss:$9 sm:$0xff] %v538_v50  ;;  %v588_v50 = vperm.slane %v525_v46, 3 }
 0x115   : > { %605 = vst [vmem:[#allocation1 + $0x2] ss:$9 sm:$0xff] %v539_v51 }
 0x116   : > { %607 = vst [vmem:[#allocation1 + $0x3] ss:$9 sm:$0xff] %v540_v53  ;;  %v589_v53 = vperm.slane %v525_v46, 4 }
 0x117   : > { %609 = vst [vmem:[#allocation1 + $0x4] ss:$9 sm:$0xff] %v541_v54  ;;  %v590_v54 = vperm.slane %v525_v46, 5 }
 0x118   : > { %611 = vst [vmem:[#allocation1 + $0x5] ss:$9 sm:$0xff] %v542_v55  ;;  %v591_v55 = vperm.slane %v525_v46, 6 }
 0x119   : > { %613 = vst [vmem:[#allocation1 + $0x6] ss:$9 sm:$0xff] %v543_v56  ;;  %v592_v56 = vperm.slane %v525_v46, 7 }
 0x11a   : > { %615 = vst [vmem:[#allocation1 + $0x7] ss:$9 sm:$0xff] %v544_v57  ;;  %v528_v57 = vpop.xlane.xlu0 %527 }
 0x11b   : > { %v593_v58 = vperm.slane %v528_v57, 0 }
 0x121   : > { %v616_v62 = vld [vmem:[#allocation1] sm:$0xff] }
 0x122   : > { %617 = vst [vmem:[#allocation1] ss:$9 sm:$0xff] %v545_v59  ;;  %681 = vperm.xlu1 %993, %v616_v62   ;;  %v594_v59 = vperm.slane %v528_v57, 1 }
 0x123   : > { %618 = vst [vmem:[#allocation1 + $0x1] ss:$9 sm:$0xff] %v546_v60  ;;  %v595_v60 = vperm.slane %v528_v57, 2 }
 0x124   : > { %619 = vst [vmem:[#allocation1 + $0x2] ss:$9 sm:$0xff] %v547_v61  ;;  %v596_v61 = vperm.slane %v528_v57, 3 }
 0x125   : > { %620 = vst [vmem:[#allocation1 + $0x3] ss:$9 sm:$0xff] %v548_v63  ;;  %v597_v63 = vperm.slane %v528_v57, 4 }
 0x126   : > { %621 = vst [vmem:[#allocation1 + $0x4] ss:$9 sm:$0xff] %v549_v0  ;;  %v598_v0 = vperm.slane %v528_v57, 5 }
 0x127   : > { %622 = vst [vmem:[#allocation1 + $0x5] ss:$9 sm:$0xff] %v550_v1  ;;  %v599_v1 = vperm.slane %v528_v57, 6 }
 0x128   : > { %623 = vst [vmem:[#allocation1 + $0x6] ss:$9 sm:$0xff] %v551_v2  ;;  %v600_v2 = vperm.slane %v528_v57, 7 }
 0x129   : > { %624 = vst [vmem:[#allocation1 + $0x7] ss:$9 sm:$0xff] %v552_v3  ;;  %v1116_v3 = vmov 0.0  }
 0x12a   : > { %213 = vst.msk [vmem:[#allocation3] sm:$0x1] %vm211_vm0, %v1116_v3 }
 0x130   : > { %v625_v8 = vld [vmem:[#allocation1] sm:$0xff] }
 0x131   : > { %626 = vst [vmem:[#allocation1] ss:$9 sm:$0xff] %v553_v5  ;;  %684 = vperm.xlu2 %992, %v625_v8   ;;  %v1232_v5 = vpop.permute.xlu1 %451 }
 0x132   : > { %627 = vst [vmem:[#allocation1 + $0x1] ss:$9 sm:$0xff] %v554_v6  ;;  %v1234_v6 = vpop.permute.xlu2 %457 }
 0x133   : > { %628 = vst [vmem:[#allocation1 + $0x2] ss:$9 sm:$0xff] %v555_v7  ;;  %v1117_v7 = vmov -inf  }
 0x134   : > { %629 = vst [vmem:[#allocation1 + $0x3] ss:$9 sm:$0xff] %v556_v9  ;;  %v739_v9 = vld [vmem:[%s1330_s1 + $0x30] sm:$0xff] }
 0x135   : > { %630 = vst [vmem:[#allocation1 + $0x4] ss:$9 sm:$0xff] %v557_v10 }
 0x136   : > { %631 = vst [vmem:[#allocation1 + $0x5] ss:$9 sm:$0xff] %v558_v11  ;;  %v738_v11 = vld [vmem:[%s1330_s1 + $0x28] sm:$0xff] }
 0x137   : > { %632 = vst [vmem:[#allocation1 + $0x6] ss:$9 sm:$0xff] %v559_v12  ;;  %v230_v12 = vlaneseq }
 0x138   : > { %633 = vst [vmem:[#allocation1 + $0x7] ss:$9 sm:$0xff] %v560_v13  ;;  %v737_v13 = vld [vmem:[%s1330_s1 + $0x20] sm:$0xff] }
 0x139   : > { %212 = vst.msk [vmem:[#allocation2] sm:$0x1] %vm211_vm0, %v1117_v7 }
 0x13a   : > { %v1237_v8 = vpop.permute.xlu1 %454 }
 0x13f   : > { %v634_v18 = vld [vmem:[#allocation1] sm:$0xff] }
 0x140   : > { %635 = vst [vmem:[#allocation1] ss:$9 sm:$0xff] %v561_v15  ;;  %687 = vperm.xlu0 %994, %v634_v18   ;;  %v736_v15 = vld [vmem:[%s1330_s1 + $0x18] sm:$0xff]  ;;  %v231_v18 = vand.u32 127, %v230_v12 }
 0x141   : > { %636 = vst [vmem:[#allocation1 + $0x1] ss:$9 sm:$0xff] %v562_v16  ;;  %v735_v16 = vld [vmem:[%s1330_s1 + $0x10] sm:$0xff] }
 0x142   : > { %637 = vst [vmem:[#allocation1 + $0x2] ss:$9 sm:$0xff] %v563_v17  ;;  %v492_v35 = vadd.s32 4294967248, %v231_v18 }
 0x143   : > { %638 = vst [vmem:[#allocation1 + $0x3] ss:$9 sm:$0xff] %v564_v19  ;;  %v734_v19 = vld [vmem:[%s1330_s1 + $0x8] sm:$0xff] }
 0x144   : > { %639 = vst [vmem:[#allocation1 + $0x4] ss:$9 sm:$0xff] %v565_v20 }
 0x145   : > { %640 = vst [vmem:[#allocation1 + $0x5] ss:$9 sm:$0xff] %v566_v21  ;;  %v476_v21 = vadd.s32 4294967280, %v231_v18 }
 0x146   : > { %641 = vst [vmem:[#allocation1 + $0x6] ss:$9 sm:$0xff] %v567_v22  ;;  %v733_v22 = vld [vmem:[%s1330_s1] sm:$0xff] }
 0x147   : > { %642 = vst [vmem:[#allocation1 + $0x7] ss:$9 sm:$0xff] %v568_v23  ;;  %v472_v23 = vadd.s32 4294967288, %v231_v18 }
 0x14e   : > { %v643_v28 = vld [vmem:[#allocation1] sm:$0xff] }
 0x14f   : > { %644 = vst [vmem:[#allocation1] ss:$9 sm:$0xff] %v569_v25  ;;  %690 = vperm.xlu2 %992, %v643_v28   ;;  %v484_v28 = vadd.s32 4294967264, %v231_v18 }
 0x150   : > { %645 = vst [vmem:[#allocation1 + $0x1] ss:$9 sm:$0xff] %v570_v26 }
 0x151   : > { %646 = vst [vmem:[#allocation1 + $0x2] ss:$9 sm:$0xff] %v571_v27 }
 0x152   : > { %647 = vst [vmem:[#allocation1 + $0x3] ss:$9 sm:$0xff] %v572_v29  ;;  %v480_v29 = vadd.s32 4294967272, %v231_v18 }
 0x153   : > { %648 = vst [vmem:[#allocation1 + $0x4] ss:$9 sm:$0xff] %v573_v30 }
 0x154   : > { %649 = vst [vmem:[#allocation1 + $0x5] ss:$9 sm:$0xff] %v574_v31 }
 0x155   : > { %650 = vst [vmem:[#allocation1 + $0x6] ss:$9 sm:$0xff] %v575_v33 }
 0x156   : > { %651 = vst [vmem:[#allocation1 + $0x7] ss:$9 sm:$0xff] %v576_v34 }
 0x158   : > { %v1245_v10 = vpop.permute.xlu0 %460 }
 0x15d   : > { %v652_v40 = vld [vmem:[#allocation1] sm:$0xff] }
 0x15e   : > { %693 = vperm.xlu1 %993, %v652_v40   ;;  %653 = vst [vmem:[#allocation1] ss:$9 sm:$0xff] %v577_v36  ;;  %v496_v40 = vadd.s32 4294967240, %v231_v18 }
 0x15f   : > { %654 = vst [vmem:[#allocation1 + $0x1] ss:$9 sm:$0xff] %v578_v37  ;;  %v488_v37 = vadd.s32 4294967256, %v231_v18 }
 0x160   : > { %655 = vst [vmem:[#allocation1 + $0x2] ss:$9 sm:$0xff] %v579_v38 }
 0x161   : > { %656 = vst [vmem:[#allocation1 + $0x3] ss:$9 sm:$0xff] %v580_v39 }
 0x162   : > { %657 = vst [vmem:[#allocation1 + $0x4] ss:$9 sm:$0xff] %v581_v41 }
 0x163   : > { %658 = vst [vmem:[#allocation1 + $0x5] ss:$9 sm:$0xff] %v582_v43 }
 0x164   : > { %659 = vst [vmem:[#allocation1 + $0x6] ss:$9 sm:$0xff] %v583_v44 }
 0x165   : > { %660 = vst [vmem:[#allocation1 + $0x7] ss:$9 sm:$0xff] %v584_v45  ;;  %v473_v45 = vperm.slane %v1232_v5, %v472_v23 }
 0x16c   : > { %v661_v51 = vld [vmem:[#allocation1] sm:$0xff] }
 0x16d   : > { %696 = vperm.xlu2 %992, %v661_v51   ;;  %662 = vst [vmem:[#allocation1] ss:$9 sm:$0xff] %v585_v47  ;;  %v477_v47 = vperm.slane %v1237_v8, %v476_v21  ;;  %v471_v51 = vperm.slane %v1230_v4, %v231_v18  ;;  %v271_v4 = vld [vmem:[#allocation2] sm:$0x1] }
 0x16e   : > { %663 = vst [vmem:[#allocation1 + $0x1] ss:$9 sm:$0xff] %v586_v48 }
 0x16f   : > { %664 = vst [vmem:[#allocation1 + $0x2] ss:$9 sm:$0xff] %v587_v49  ;;  %v504_v49 = vld [vmem:[#allocation3] sm:$0x1] }
 0x170   : > { %665 = vst [vmem:[#allocation1 + $0x3] ss:$9 sm:$0xff] %v588_v50 }
 0x171   : > { %666 = vst [vmem:[#allocation1 + $0x4] ss:$9 sm:$0xff] %v589_v53 }
 0x172   : > { %667 = vst [vmem:[#allocation1 + $0x5] ss:$9 sm:$0xff] %v590_v54 }
 0x173   : > { %668 = vst [vmem:[#allocation1 + $0x6] ss:$9 sm:$0xff] %v591_v55 }
 0x174   : > { %669 = vst [vmem:[#allocation1 + $0x7] ss:$9 sm:$0xff] %v592_v56  ;;  %v475_v56 = vsel %vm474_vm1, %v473_v45, %v471_v51 }
 0x175   : > { %463 = vperm.xlu2 %992, %v1220_v32  }
 0x17b   : > { %v670_v62 = vld [vmem:[#allocation1] sm:$0xff] }
 0x17c   : > { %699 = vperm.xlu0 %994, %v670_v62   ;;  %671 = vst [vmem:[#allocation1] ss:$9 sm:$0xff] %v593_v58  ;;  %v479_v58 = vsel %vm478_vm2, %v477_v47, %v475_v56 }
 0x17d   : > { %672 = vst [vmem:[#allocation1 + $0x1] ss:$9 sm:$0xff] %v594_v59  ;;  %v485_v59 = vperm.slane %v1245_v10, %v484_v28 }
 0x17e   : > { %673 = vst [vmem:[#allocation1 + $0x2] ss:$9 sm:$0xff] %v595_v60  ;;  %v481_v60 = vperm.slane %v1234_v6, %v480_v29 }
 0x17f   : > { %674 = vst [vmem:[#allocation1 + $0x3] ss:$9 sm:$0xff] %v596_v61 }
 0x180   : > { %675 = vst [vmem:[#allocation1 + $0x4] ss:$9 sm:$0xff] %v597_v63  ;;  %v483_v63 = vsel %vm482_vm3, %v481_v60, %v479_v58 }
 0x181   : > { %676 = vst [vmem:[#allocation1 + $0x5] ss:$9 sm:$0xff] %v598_v0 }
 0x182   : > { %677 = vst [vmem:[#allocation1 + $0x6] ss:$9 sm:$0xff] %v599_v1  ;;  %v487_v1 = vsel %vm486_vm4, %v485_v59, %v483_v63 }
 0x183   : > { %678 = vst [vmem:[#allocation1 + $0x7] ss:$9 sm:$0xff] %v600_v2 }
 0x184   : > { %469 = vperm.xlu0 %994, %v1224_v52   ;;  %v740_v52 = vld [vmem:[%s1330_s1 + $0x38] sm:$0xff] }
 0x185   : > { %753 = vmatpush.msra.mxu0 %v740_v52 }
 0x187   : > { %754 = vmatpush.msra.mxu0 %v739_v9 }
 0x189   : > { %755 = vmatpush.msra.mxu0 %v738_v11  ;;  %v766_v11 = vld [vmem:[%s1331_s2] sm:$0xf] }
 0x18a   : > { %v679_v32 = vld [vmem:[#allocation1] sm:$0xff]  ;;  %919 = vmatpush.msk.msra.mxu1 %vm771_vm10, %v766_v11 }
 0x18b   : > { %702 = vperm.xlu1 %993, %v679_v32   ;;  %756 = vmatpush.msra.mxu0 %v737_v13 }
 0x18d   : > { %757 = vmatpush.msra.mxu0 %v736_v15 }
 0x18f   : > { %758 = vmatpush.msra.mxu0 %v735_v16 }
 0x191   : > { %759 = vmatpush.msra.mxu0 %v734_v19 }
 0x193   : > { %466 = vperm.xlu1 %993, %v1222_v42   ;;  %v685_v42 = vpop.permute.xlu2 %684  ;;  %760 = vmatpush.msra.mxu0 %v733_v22 }
 0x194   : > { %v682_v14 = vpop.permute.xlu1 %681  ;;  %v705_v26 = vperm.slane %v685_v42, %v472_v23 }
 0x195   : > { %v704_v24 = vperm.slane %v682_v14, %v231_v18 }
 0x197   : > { %v706_v30 = vsel %vm474_vm1, %v705_v26, %v704_v24 }
 0x1a9   : > { %v691_v17 = vpop.permute.xlu2 %690 }
 0x1aa   : > { %v709_v36 = vperm.slane %v691_v17, %v480_v29 }
 0x1b2   : > { %v688_v20 = vpop.permute.xlu0 %687 }
 0x1b3   : > { %v707_v25 = vperm.slane %v688_v20, %v476_v21 }
 0x1b5   : > { %v708_v33 = vsel %vm478_vm2, %v707_v25, %v706_v30 }
 0x1b6   : > { %v710_v39 = vsel %vm482_vm3, %v709_v36, %v708_v33 }
 0x1c7   : > { %v697_v31 = vpop.permute.xlu2 %696 }
 0x1c8   : > { %v713_v44 = vperm.slane %v697_v31, %v488_v37 }
 0x1cf   : > { %v464_v54 = vpop.permute.xlu2 %463 }
 0x1d0   : > { %v694_v27 = vpop.permute.xlu1 %693  ;;  %v489_v61 = vperm.slane %v464_v54, %v488_v37 }
 0x1d1   : > { %v711_v34 = vperm.slane %v694_v27, %v484_v28 }
 0x1d2   : > { %v491_v32 = vsel %vm490_vm6, %v489_v61, %v487_v1 }
 0x1d3   : > { %v712_v41 = vsel %vm486_vm4, %v711_v34, %v710_v39 }
 0x1d4   : > { %v714_v48 = vsel %vm490_vm6, %v713_v44, %v712_v41 }
 0x1ee   : > { %v700_v38 = vpop.permute.xlu0 %699 }
 0x1ef   : > { %v715_v43 = vperm.slane %v700_v38, %v492_v35 }
 0x1f1   : > { %v716_v53 = vsel %vm494_vm5, %v715_v43, %v714_v48 }
 0x1f6   : > { %v470_v62 = vpop.permute.xlu0 %469 }
 0x1f7   : > { %v497_v3 = vperm.slane %v470_v62, %v496_v40 }
 0x1fd   : > { %v703_v46 = vpop.permute.xlu1 %702 }
 0x1fe   : > { %v717_v50 = vperm.slane %v703_v46, %v496_v40 }
 0x200   : > { %v718_v55 = vsel %vm498_vm7, %v717_v50, %v716_v53 }
 0x201   : > { %v720_v57 = vadd.f32 %v718_v55, %v504_v49 }
 0x203   : > { %721 = vst.msk [vmem:[#allocation3] sm:$0x1] %vm211_vm0, %v720_v57 }
 0x205   : > { %v467_v0 = vpop.permute.xlu1 %466 }
 0x206   : > { %v493_v2 = vperm.slane %v467_v0, %v492_v35 }
 0x208   : > { %v495_v5 = vsel %vm494_vm5, %v493_v2, %v491_v32 }
 0x209   : > { %v499_v7 = vsel %vm498_vm7, %v497_v3, %v495_v5 }
 0x20a   : > { %v501_v8 = vmax.f32 %v271_v4, %v499_v7  ;;  %v726_v6 = vld [vmem:[#allocation3] sm:$0x1] }
 0x20b   : > { %v727_v52 = vmul.f32 0.00390625, %v726_v6 }
 0x20c   : > { %503 = vst.msk [vmem:[#allocation2] sm:$0x1] %vm211_vm0, %v501_v8 }
 0x20d   : > { %v729_v42 = vperm.slane %v727_v52, 0 }
 0x213   : > { %v725_v9 = vld [vmem:[#allocation2] sm:$0x1] }
 0x214   : > { %v732_v10 = vsel %vm731_vm8, %v725_v9, %v729_v42 }
 0x215   : > { %918 = vmatmul.msk.f32.vlgmr.msra.gmra.mxu0 %vm741_vm9, %v732_v10 }
 0x292   : > { %v762_v12 = vpop.f32.mrf.mxu0 }
 0x293   : > { %v765_v13 = vmax.f32 %v762_v12, 0.0 }
 0x295   : > { %920 = vmatmul.msk.f32.vlgmr.msra.gmra.mxu1 %vm767_vm11, %v765_v13 }
 0x312   : > { %v792_v14 = vpop.f32.mrf.mxu1 }
 0x313   : > { %v796_v15 = vrot.slane %v792_v14, 1 }
 0x315   : > { %v798_v16 = vadd.f32 %v796_v15, %v792_v14 }
 0x317   : > { %v921_v17 = vmul.f32 -1.442695, %v798_v16 }
 0x319   : > { %995 = vpow2.f32 %v921_v17 }
 0x31f   : > { %v996_v18 = vpop.eup %995 }
 0x320   : > { %v802_v19 = vadd.f32 1.0, %v996_v18 }
 0x322   : > { %997 = vrcp.f32 %v802_v19  ;;  %v814_v23 = vand.u32 2147483648, %v802_v19  ;;  %v812_v25 = vand.u32 2147483647, %v802_v19  ;;  %vm808_vm13 = vweird.f32 %v802_v19 }
 0x324   : > { %v815_v27 = vor.u32 1.1754944e-38, %v814_v23  ;;  %vm813_vm15 = vcmp.eq.f32.partialorder %v812_v25, 8.507059e+37 }
 0x328   : > { %v998_v20 = vpop.eup %997 }
 0x329   : > { %v804_v21 = vmul.f32 %v998_v20, %v802_v19  ;;  %vm809_vm12 = vweird.f32 %v998_v20 }
 0x32a   : > { %vm810_vm14 = vmor %vm808_vm13, %vm809_vm12 }
 0x32b   : > { %v805_v22 = vsub.f32 1.0, %v804_v21 }
 0x32d   : > { %v806_v24 = vmul.f32 %v998_v20, %v805_v22 }
 0x32f   : > { %v807_v26 = vadd.f32 %v998_v20, %v806_v24 }
 0x331   : > { %v811_v28 = vsel %vm810_vm14, %v998_v20, %v807_v26 }
 0x332   : > { %v816_v29 = vsel %vm813_vm15, %v815_v27, %v811_v28 }
 0x333   : > { %818 = vst.msk [vmem:[%s205_s5] sm:$0x1] %vm211_vm0, %v816_v29 }
 0x334   : > { %1056 = shalt.err (!%p1053_p13)
}
 0x335   : > { %927 = dma.vmem_to_hbm [thread:$0]  (%p1189_p9), %s831_s6, 16, %s833_s7, %s820_s15  }
 0x336 PF: > { %s844_s19 = sand.u32 1, %s1091_s12   ;;  %p934_p0 = pnand %p912_p12, %p1196_p11 }
 0x337   : > { %s845_s29 = scalar_lea.sflag [#allocation6], %s844_s19 }
 0x338   : > { %p935_p1 = pneg %p934_p0 }
 0x33a   : > { %1086 = dma.done.wait (%p935_p1), %s845_s29, 16  }
 0x33b   : > { %1088 = vsyncadd (%p935_p1), %s845_s29, 4294967280  ;;  %s19_s17 = sadd.s32 1, %s1111_s17   ;;  %s1337_s12 = smov %s1095_s13 }
 0x33c   : > { %p16_p2 = scmp.ge.s32.totalorder %s19_s17, 4   ;;  %s1338_s13 = smov %s1099_s14 }
 0x33d   : > { %s1339_s14 = smov %s1194_s26  ;;  %s1340_s15 = smov %s1107_s16 }
 0x33e   : > { %s1341_s16 = smov %s1343_s20  ;;  %18 = sbr.rel (!%p16_p2) target bundleno = 6 (0x6), region = 99 }
 0x343   :  { %850 = vsyncpa [#allocation5], 1 }
 0x344   :  { %852 = vsyncpa [#allocation5 + $0x1], 1 }
 0x345   :  { %853 = vsyncpa [#allocation6], 1 }
 0x346   :  { %855 = vsyncpa [#allocation6 + $0x1], 1 }

</bundles_post_ra>
